<compile_context>
chip_gen: v7x
topology: tpu7x:2x2x1
jax: 0.10.0
libtpu: 0.0.40
codegen_flags: <defaults>
</compile_context>

<pallas_src>
import jax
import jax.numpy as jnp
from jax.experimental import pallas as pl
from jax.experimental.pallas import tpu as pltpu


def _round_up(n: int, m: int) -> int:
    return ((n + m - 1) // m) * m


def _make_kernel(C: int, CP: int, HP: int, TILE_B: int):
    """Kernel closure over static sizes. One batch tile per grid step."""

    def kernel(x_ref, p_ref, out_ref):
        x = x_ref[...]                                    # [TILE_B, CP] f32

        # Packed, padded parameter block (VMEM-resident across the grid):
        #   rows [0, CP)            -> W1  (padded [CP, HP])
        #   row  CP (8-row region)  -> b1  (padded [1, HP])
        #   rows [CP+8, CP+8+HP)    -> W2  (padded [HP, CP])
        w1 = p_ref[0:CP, 0:HP]                            # [CP, HP]
        b1 = p_ref[CP:CP + 1, 0:HP]                       # [1, HP]
        w2 = p_ref[CP + 8:CP + 8 + HP, 0:CP]              # [HP, CP]

        # Hidden LayDense: linear + bias + tanh. Padded cols of W1/b1 are zero,
        # so padded hidden lanes come out as tanh(0) = 0.
        h = jnp.tanh(jnp.dot(x, w1, preferred_element_type=jnp.float32) + b1)

        # Logits LayDense: linear, no bias. Padded rows/cols of W2 are zero.
        logits = jnp.dot(h, w2, preferred_element_type=jnp.float32)

        # Softmax only over the C valid classes: mask padded lanes to -inf-ish.
        col = jax.lax.broadcasted_iota(jnp.int32, (TILE_B, CP), 1)
        masked = jnp.where(col < C, logits, jnp.float32(-1e30))
        m = jnp.max(masked, axis=-1, keepdims=True)
        e = jnp.exp(masked - m)
        # Exact reciprocal keeps sum(probs) == 1 within 1e-5.
        probs = e * pl.reciprocal(jnp.sum(e, axis=-1, keepdims=True), approx=False)

        # Single fused lane-dense output slab: [ h | logits | probs ].
        out_ref[:, 0:HP] = h
        out_ref[:, HP:HP + CP] = logits
        out_ref[:, HP + CP:HP + 2 * CP] = probs

    return kernel


def rps_agent_forward(op_policy, w1, b1, w2, *, tile_b: int = 512):
    """op_policy: [B, num_classes] f32. Weights in [in, out] layout.
    Returns dict matching RPSAgent.forward (defaults)."""
    f32 = jnp.float32
    B, C = op_policy.shape
    H = w1.shape[1]

    CP = _round_up(C, 128)                 # lane-dense class width
    HP = _round_up(H, 128)                 # lane-dense hidden width
    PW = max(CP, HP)                       # param-block lane width
    TILE_B = min(tile_b, _round_up(B, 8))  # batch tile (multiple of 8)
    B_pad = _round_up(B, TILE_B)

    # Zero-pad input and parameters (zeros keep the math exact for valid lanes).
    x_p = jnp.zeros((B_pad, CP), f32).at[:B, :C].set(op_policy.astype(f32))
    params = jnp.zeros((CP + 8 + HP, PW), f32)
    params = params.at[0:C, 0:H].set(w1.astype(f32))
    params = params.at[CP, 0:H].set(b1.astype(f32))
    params = params.at[CP + 8:CP + 8 + H, 0:C].set(w2.astype(f32))

    out_w = HP + 2 * CP
    kernel = _make_kernel(C, CP, HP, TILE_B)

    slab = pl.pallas_call(
        kernel,
        out_shape=jax.ShapeDtypeStruct((B_pad, out_w), f32),
        grid=(B_pad // TILE_B,),
        in_specs=[
            # Batch tile of the (padded) input.
            pl.BlockSpec((TILE_B, CP), lambda i: (i, 0)),
            # Packed parameter block: constant index_map -> VMEM-resident,
            # single DMA for the whole grid.
            pl.BlockSpec((CP + 8 + HP, PW), lambda i: (0, 0)),
        ],
        out_specs=pl.BlockSpec((TILE_B, out_w), lambda i: (i, 0)),
        compiler_params=pltpu.CompilerParams(
            dimension_semantics=("parallel",)),  # megacore-shardable on v7x
    )(x_p, params)

    dense = slab[:B, 0:H]
    logits = slab[:B, HP:HP + C]
    probs = slab[:B, HP + CP:HP + CP + C]

    # do_zeroes=False by default, so 'zeroes' is None.
    # TODO(synk): 'zeroes' path (pre-activation stats) and the optional
    # LayerNorm branches (in_lay_norm / lay_norm) are not implemented.
    return {"dense_out": dense, "logits": logits, "probs": probs, "zeroes": None}


if __name__ == "__main__":
    # Small shapes consistent with the module: num_classes=4, hidden_width=32, batch=8.
    B, NUM_CLASSES, HIDDEN = 8, 4, 32

    key = jax.random.PRNGKey(0)
    k_x, k_w1, k_b1, k_w2 = jax.random.split(key, 4)

    # op_policy rows are probability-like vectors (opponent policy).
    x_raw = jax.random.uniform(k_x, (B, NUM_CLASSES), dtype=jnp.float32)
    op_policy = x_raw / jnp.sum(x_raw, axis=-1, keepdims=True)

    # Deterministic synthetic parameters, [in, out] layout (== PyTorch x @ W.T).
    w1 = 0.1 * jax.random.normal(k_w1, (NUM_CLASSES, HIDDEN), dtype=jnp.float32)
    b1 = 0.1 * jax.random.normal(k_b1, (HIDDEN,), dtype=jnp.float32)
    w2 = 0.1 * jax.random.normal(k_w2, (HIDDEN, NUM_CLASSES), dtype=jnp.float32)

    out = rps_agent_forward(op_policy, w1, b1, w2)
    jax.block_until_ready(out["probs"])

    # Pure-JAX reference check.
    h_ref = jnp.tanh(op_policy @ w1 + b1)
    logits_ref = h_ref @ w2
    probs_ref = jax.nn.softmax(logits_ref, axis=-1)
    assert out["dense_out"].shape == (B, HIDDEN)
    assert out["logits"].shape == (B, NUM_CLASSES)
    assert out["probs"].shape == (B, NUM_CLASSES)
    assert jnp.allclose(out["dense_out"], h_ref, atol=1e-5)
    assert jnp.allclose(out["logits"], logits_ref, atol=1e-5)
    assert jnp.allclose(out["probs"], probs_ref, atol=1e-5)
    assert jnp.allclose(jnp.sum(out["probs"], axis=-1), 1.0, atol=1e-5)
    assert out["zeroes"] is None

    print("KERNEL_OK")
</pallas_src>

<mosaic_0001>
module attributes {stable_mosaic.version = 11 : i64} {
  func.func @kernel(%arg0: i32, %arg1: memref<8x128xf32, #tpu.memory_space<vmem>>, %arg2: memref<264x128xf32, #tpu.memory_space<vmem>>, %arg3: memref<8x384xf32, #tpu.memory_space<vmem>>) attributes {dimension_semantics = [#tpu.dimension_semantics<parallel>], iteration_bounds = array<i64: 1>, scalar_prefetch = 0 : i64, scratch_operands = 0 : i64, tpu.core_type = #tpu.core_type<tc>, window_params = [{transform_indices = @transform_0, window_bounds = array<i64: 8, 128>}, {pipeline_mode = #tpu.pipeline_mode<synchronous>, transform_indices = @transform_1, window_bounds = array<i64: 264, 128>}, {transform_indices = @transform_2, window_bounds = array<i64: 8, 384>}]} {
    %c0 = arith.constant 0 : index
    %c0_0 = arith.constant 0 : index
    %0 = vector.load %arg1[%c0, %c0_0] : memref<8x128xf32, #tpu.memory_space<vmem>>, vector<8x128xf32>
    %c0_1 = arith.constant 0 : index
    %c0_2 = arith.constant 0 : index
    %1 = vector.load %arg2[%c0_1, %c0_2] : memref<264x128xf32, #tpu.memory_space<vmem>>, vector<128x128xf32>
    %c128 = arith.constant 128 : index
    %c0_3 = arith.constant 0 : index
    %2 = vector.load %arg2[%c128, %c0_3] : memref<264x128xf32, #tpu.memory_space<vmem>>, vector<1x128xf32>
    %c136 = arith.constant 136 : index
    %c0_4 = arith.constant 0 : index
    %3 = vector.load %arg2[%c136, %c0_4] : memref<264x128xf32, #tpu.memory_space<vmem>>, vector<128x128xf32>
    %cst = arith.constant dense<0.000000e+00> : vector<8x128xf32>
    %4 = tpu.matmul %0, %1, %cst {dimension_numbers = #tpu.dot_dimension_numbers<[1], [0], [0], [1], [0, 0, 1, 1], [], []>} : vector<8x128xf32>, vector<128x128xf32>, vector<8x128xf32> -> vector<8x128xf32>
    %5 = vector.broadcast %2 : vector<1x128xf32> to vector<8x128xf32>
    %6 = arith.addf %4, %5 : vector<8x128xf32>
    %7 = math.tanh %6 : vector<8x128xf32>
    %cst_5 = arith.constant dense<0.000000e+00> : vector<8x128xf32>
    %8 = tpu.matmul %7, %3, %cst_5 {dimension_numbers = #tpu.dot_dimension_numbers<[1], [0], [0], [1], [0, 0, 1, 1], [], []>} : vector<8x128xf32>, vector<128x128xf32>, vector<8x128xf32> -> vector<8x128xf32>
    %9 = tpu.iota {dimensions = array<i32: 1>} : vector<8x128xi32>
    %c4_i32 = arith.constant 4 : i32
    %10 = vector.broadcast %c4_i32 : i32 to vector<8x128xi32>
    %11 = arith.cmpi slt, %9, %10 : vector<8x128xi32>
    %cst_6 = arith.constant -1.000000e+30 : f32
    %12 = vector.broadcast %cst_6 : f32 to vector<8x128xf32>
    %13 = arith.select %11, %8, %12 : vector<8x128xi1>, vector<8x128xf32>
    %cst_7 = arith.constant dense<0xFF800000> : vector<8xf32>
    %14 = vector.multi_reduction <maximumf>, %13, %cst_7 [1] : vector<8x128xf32> to vector<8xf32>
    %15 = vector.shape_cast %14 : vector<8xf32> to vector<8x1xf32>
    %16 = vector.broadcast %15 : vector<8x1xf32> to vector<8x128xf32>
    %17 = arith.subf %13, %16 : vector<8x128xf32>
    %18 = math.exp %17 : vector<8x128xf32>
    %cst_8 = arith.constant dense<0.000000e+00> : vector<8xf32>
    %19 = vector.multi_reduction <add>, %18, %cst_8 [1] : vector<8x128xf32> to vector<8xf32>
    %20 = vector.shape_cast %19 : vector<8xf32> to vector<8x1xf32>
    %21 = tpu.reciprocal %20 : vector<8x1xf32> -> vector<8x1xf32>
    %22 = vector.broadcast %21 : vector<8x1xf32> to vector<8x128xf32>
    %23 = arith.mulf %18, %22 : vector<8x128xf32>
    %c0_9 = arith.constant 0 : index
    %c0_10 = arith.constant 0 : index
    %24 = vector.load %arg3[%c0_9, %c0_10] : memref<8x384xf32, #tpu.memory_space<vmem>>, vector<8x128xf32>
    tpu.vector_store %arg3[%c0_9, %c0_10], %7 {strides = array<i32>} : memref<8x384xf32, #tpu.memory_space<vmem>>, vector<8x128xf32>,
    %c0_11 = arith.constant 0 : index
    %c128_12 = arith.constant 128 : index
    %25 = vector.load %arg3[%c0_11, %c128_12] : memref<8x384xf32, #tpu.memory_space<vmem>>, vector<8x128xf32>
    tpu.vector_store %arg3[%c0_11, %c128_12], %8 {strides = array<i32>} : memref<8x384xf32, #tpu.memory_space<vmem>>, vector<8x128xf32>,
    %c0_13 = arith.constant 0 : index
    %c256 = arith.constant 256 : index
    %26 = vector.load %arg3[%c0_13, %c256] : memref<8x384xf32, #tpu.memory_space<vmem>>, vector<8x128xf32>
    tpu.vector_store %arg3[%c0_13, %c256], %23 {strides = array<i32>} : memref<8x384xf32, #tpu.memory_space<vmem>>, vector<8x128xf32>,
    return
  }
  func.func @transform_0(%arg0: i32) -> (i32, i32) {
    %c0_i32 = arith.constant 0 : i32
    %c0_i32_0 = arith.constant 0 : i32
    return %arg0, %c0_i32 : i32, i32
  }
  func.func @transform_1(%arg0: i32) -> (i32, i32) {
    %c0_i32 = arith.constant 0 : i32
    %c0_i32_0 = arith.constant 0 : i32
    %c0_i32_1 = arith.constant 0 : i32
    return %c0_i32, %c0_i32_0 : i32, i32
  }
  func.func @transform_2(%arg0: i32) -> (i32, i32) {
    %c0_i32 = arith.constant 0 : i32
    %c0_i32_0 = arith.constant 0 : i32
    return %arg0, %c0_i32 : i32, i32
  }
}

</mosaic_0001>

<bundles_post_ra>
// kernel: tpu_custom_call.1
= control target key start
LH: loop header
LB: loop body
LE: loop exit
PB: predicated region body
PF: predicated region fallthrough
CT: control target
= control target key end

     0   :  { %7 = vsyncpa [#allocation3], 0  ;;  %s570_s0 = inlined_call_operand.hbm [shape: f32[8,128], index: 0, kind: input, shape index: {}]   ;;  %s571_s1 = inlined_call_operand.hbm [shape: f32[264,128], index: 1, kind: input, shape index: {}]   ;;  %s572_s2 = inlined_call_operand.hbm [shape: f32[8,384], index: 2, kind: output, shape index: {}]  }
   0x1   :  { %8 = vsyncpa [#allocation6], 0 }
   0x2   :  { %9 = vsyncpa [#allocation4], 0  ;;  %s488_s9 = smov [#allocation2]   ;;  %s489_s11 = smov [#allocation5]  }
   0x3   :  { %s16_s10 = sshll.u32 %s488_s9, 4  ;;  %s25_s12 = sshll.u32 %s489_s11, 4  ;;  %s17_s10 = int_to_ptr.vmem [resolvable:$true] %s16_s10  ;;  %s511_s12 = int_to_ptr.vmem [resolvable:$true] %s25_s12 }
   0x4   :  { %s416_s15 = scalar_lea.hbm %s570_s0, 128 }
   0x5   :  { %p417_p0 = scmp.ne.s32.totalorder %s570_s0, %s416_s15  ;;  %p420_p1 = scmp.lt.u32.totalorder %s416_s15, %s570_s0 }
   0x7   :  { %p422_p2 = pnand %p420_p1, %p417_p0 }
   0x9   :  { %425 = shalt.err (!%p422_p2)
}
   0xa   :  { %s426_s20 = scalar_lea.vmem %s17_s10, 128  ;;  %p431_p4 = scmp.lt.s32.totalorder %s17_s10, %s17_s10 }
   0xb   :  { %p427_p3 = scmp.ne.s32.totalorder %s17_s10, %s426_s20  ;;  %p432_p5 = scmp.lt.s32.totalorder %s426_s20, %s426_s20 }
   0xd   :  { %p433_p6 = por %p432_p5, %p431_p4 }
   0xf   :  { %p434_p7 = pnand %p433_p6, %p427_p3 }
  0x11   :  { %437 = shalt.err (!%p434_p7)
}
  0x12   :  { %19 = dma.hbm_to_vmem [thread:$0]  %s570_s0, 128, %s17_s10, [#allocation3]  }
  0x13   :  { %s438_s25 = scalar_lea.hbm %s571_s1, 4224 }
  0x14   :  { %p439_p8 = scmp.ne.s32.totalorder %s571_s1, %s438_s25  ;;  %p442_p9 = scmp.lt.u32.totalorder %s438_s25, %s571_s1 }
  0x16   :  { %p444_p10 = pnand %p442_p9, %p439_p8 }
  0x18   :  { %447 = shalt.err (!%p444_p10)
}
  0x19   :  { %s448_s30 = scalar_lea.vmem %s511_s12, 4224  ;;  %p453_p12 = scmp.lt.s32.totalorder %s511_s12, %s511_s12 }
  0x1a   :  { %p449_p11 = scmp.ne.s32.totalorder %s511_s12, %s448_s30  ;;  %p454_p13 = scmp.lt.s32.totalorder %s448_s30, %s448_s30 }
  0x1c   :  { %p455_p0 = por %p454_p13, %p453_p12 }
  0x1e   :  { %p456_p1 = pnand %p455_p0, %p449_p11 }
  0x20   :  { %459 = shalt.err (!%p456_p1)
}
  0x21   :  { %s490_s0 = smov 128   ;;  %s491_s3 = smov 8  }
  0x22   :  { %31 = dma.hbm_to_vmem [thread:$0]  %s571_s1, 4224, %s511_s12, [#allocation6], %s490_s0, %s490_s0, %s491_s3  }
  0x23   :  { %482 = dma.done.wait [#allocation3], 128  }
  0x24   :  { %483 = vsyncadd [#allocation3], 4294967168 }
  0x25   :  { %484 = dma.done.wait [#allocation6], 4224  }
  0x26   :  { %485 = vsyncadd [#allocation6], 4294963072  ;;  %v492_v0 = vmov 0.0|0.0   ;;  %vm493_vm0 = vmmov 0   ;;  %v494_v1 = vmov 0.0   ;;  %v39_v2 = vld [vmem:[#allocation5] sm:$0xff]  ;;  %v217_v56 = vlaneseq }
  0x27   :  { %354 = vmatprep.subr.bf16.mxu0 %v492_v0  ;;  %316 = vmatprep.mubr.msk.f32.mxu0 %vm493_vm0, %v494_v1  ;;  %v40_v3 = vld [vmem:[#allocation5 + $0x8] sm:$0xff]  ;;  %v41_v4 = vld [vmem:[#allocation5 + $0x10] sm:$0xff]  ;;  %v42_v6 = vld [vmem:[#allocation5 + $0x18] sm:$0xff]  ;;  %s495_s1 = smov [#allocation7]  }
  0x28   :  { %378 = vmatprep.subr.bf16.mxu1 %v492_v0  ;;  %351 = vmatprep.mubr.msk.f32.mxu1 %vm493_vm0, %v494_v1  ;;  %v355_v5 = vpack.c.bf16 %v40_v3, %v39_v2  ;;  %v358_v7 = vpack.c.bf16 %v42_v6, %v41_v4  ;;  %v43_v8 = vld [vmem:[#allocation5 + $0x20] sm:$0xff]  ;;  %v44_v9 = vld [vmem:[#allocation5 + $0x28] sm:$0xff]  ;;  %v57_v11 = vld [vmem:[#allocation5 + $0x90] sm:$0xff]  ;;  %v218_v57 = vand.u32 127, %v217_v56  ;;  %s239_s6 = sshll.u32 %s495_s1, 4  ;;  %s240_s6 = int_to_ptr.vmem [resolvable:$true] %s239_s6 }
  0x29   :  { %v56_v10 = vld [vmem:[#allocation5 + $0x88] sm:$0xff]  ;;  %v58_v12 = vld [vmem:[#allocation5 + $0x98] sm:$0xff]  ;;  %v59_v13 = vld [vmem:[#allocation5 + $0xa0] sm:$0xff]  ;;  %v361_v14 = vpack.c.bf16 %v44_v9, %v43_v8  ;;  %s460_s7 = scalar_lea.vmem %s240_s6, 384  ;;  %p465_p3 = scmp.lt.s32.totalorder %s240_s6, %s240_s6 }
  0x2a   :  { %356 = vmatpush3.bf16.msra.mxu0 %v355_v5  ;;  %v379_v15 = vpack.c.bf16 %v57_v11, %v56_v10  ;;  %v45_v16 = vld [vmem:[#allocation5 + $0x30] sm:$0xff]  ;;  %v46_v17 = vld [vmem:[#allocation5 + $0x38] sm:$0xff]  ;;  %v382_v18 = vpack.c.bf16 %v59_v13, %v58_v12  ;;  %v60_v19 = vld [vmem:[#allocation5 + $0xa8] sm:$0xff]  ;;  %vm219_vm1 = vcmp.lt.s32.totalorder %v218_v57, 4  ;;  %p461_p2 = scmp.ne.s32.totalorder %s240_s6, %s460_s7  ;;  %p466_p4 = scmp.lt.s32.totalorder %s460_s7, %s460_s7 }
  0x2b   :  { %357 = vmatprep.subr.bf16.mxu0 %v492_v0  ;;  %v61_v20 = vld [vmem:[#allocation5 + $0xb0] sm:$0xff]  ;;  %v364_v21 = vpack.c.bf16 %v46_v17, %v45_v16  ;;  %v47_v22 = vld [vmem:[#allocation5 + $0x40] sm:$0xff]  ;;  %v48_v23 = vld [vmem:[#allocation5 + $0x48] sm:$0xff] }
  0x2c   :  { %380 = vmatpush3.bf16.msra.mxu1 %v379_v15  ;;  %v385_v24 = vpack.c.bf16 %v61_v20, %v60_v19  ;;  %v62_v25 = vld [vmem:[#allocation5 + $0xb8] sm:$0xff]  ;;  %v63_v26 = vld [vmem:[#allocation5 + $0xc0] sm:$0xff]  ;;  %v367_v27 = vpack.c.bf16 %v48_v23, %v47_v22  ;;  %v49_v28 = vld [vmem:[#allocation5 + $0x50] sm:$0xff]  ;;  %p467_p5 = por %p466_p4, %p465_p3 }
  0x2d   :  { %381 = vmatprep.subr.bf16.mxu1 %v492_v0  ;;  %v50_v29 = vld [vmem:[#allocation5 + $0x58] sm:$0xff]  ;;  %v388_v30 = vpack.c.bf16 %v63_v26, %v62_v25  ;;  %v64_v31 = vld [vmem:[#allocation5 + $0xc8] sm:$0xff]  ;;  %v65_v32 = vld [vmem:[#allocation5 + $0xd0] sm:$0xff] }
  0x2e   :  { %359 = vmatpush3.bf16.msra.mxu0 %v358_v7  ;;  %v370_v33 = vpack.c.bf16 %v50_v29, %v49_v28  ;;  %v51_v34 = vld [vmem:[#allocation5 + $0x60] sm:$0xff]  ;;  %v52_v35 = vld [vmem:[#allocation5 + $0x68] sm:$0xff]  ;;  %v391_v36 = vpack.c.bf16 %v65_v32, %v64_v31  ;;  %v53_v38 = vld [vmem:[#allocation5 + $0x70] sm:$0xff]  ;;  %p468_p6 = pnand %p467_p5, %p461_p2 }
  0x2f   :  { %360 = vmatprep.subr.bf16.mxu0 %v492_v0  ;;  %v373_v37 = vpack.c.bf16 %v52_v35, %v51_v34  ;;  %v54_v39 = vld [vmem:[#allocation5 + $0x78] sm:$0xff]  ;;  %v67_v43 = vld [vmem:[#allocation5 + $0xe0] sm:$0xff]  ;;  %v68_v45 = vld [vmem:[#allocation5 + $0xe8] sm:$0xff] }
  0x30   :  { %383 = vmatpush3.bf16.msra.mxu1 %v382_v18  ;;  %v376_v40 = vpack.c.bf16 %v54_v39, %v53_v38  ;;  %v38_v41 = vld [vmem:[#allocation2] sm:$0xff]  ;;  %v69_v46 = vld [vmem:[#allocation5 + $0xf0] sm:$0xff]  ;;  %v71_v49 = vld [vmem:[#allocation5 + $0x100] sm:$0xff] }
  0x31   :  { %384 = vmatprep.subr.bf16.mxu1 %v492_v0  ;;  %v66_v42 = vld [vmem:[#allocation5 + $0xd8] sm:$0xff]  ;;  %v397_v47 = vpack.c.bf16 %v69_v46, %v68_v45  ;;  %v249_v51 = vld [vmem:[#allocation5 + $0x80] ss:$0 sm:$0xff] }
  0x32   :  { %362 = vmatpush3.bf16.msra.mxu0 %v361_v14  ;;  %v394_v44 = vpack.c.bf16 %v67_v43, %v66_v42  ;;  %v70_v48 = vld [vmem:[#allocation5 + $0xf8] sm:$0xff] }
  0x33   :  { %363 = vmatprep.subr.bf16.mxu0 %v492_v0  ;;  %v400_v50 = vpack.c.bf16 %v71_v49, %v70_v48 }
  0x34   :  { %386 = vmatpush3.bf16.msra.mxu1 %v385_v24 }
  0x35   :  { %387 = vmatprep.subr.bf16.mxu1 %v492_v0 }
  0x36   :  { %365 = vmatpush3.bf16.msra.mxu0 %v364_v21 }
  0x37   :  { %366 = vmatprep.subr.bf16.mxu0 %v492_v0 }
  0x38   :  { %389 = vmatpush3.bf16.msra.mxu1 %v388_v30 }
  0x39   :  { %390 = vmatprep.subr.bf16.mxu1 %v492_v0 }
  0x3a   :  { %368 = vmatpush3.bf16.msra.mxu0 %v367_v27 }
  0x3b   :  { %369 = vmatprep.subr.bf16.mxu0 %v492_v0 }
  0x3c   :  { %392 = vmatpush3.bf16.msra.mxu1 %v391_v36 }
  0x3d   :  { %393 = vmatprep.subr.bf16.mxu1 %v492_v0 }
  0x3e   :  { %371 = vmatpush3.bf16.msra.mxu0 %v370_v33 }
  0x3f   :  { %372 = vmatprep.subr.bf16.mxu0 %v492_v0 }
  0x40   :  { %395 = vmatpush3.bf16.msra.mxu1 %v394_v44 }
  0x41   :  { %396 = vmatprep.subr.bf16.mxu1 %v492_v0 }
  0x42   :  { %374 = vmatpush3.bf16.msra.mxu0 %v373_v37 }
  0x43   :  { %375 = vmatprep.subr.bf16.mxu0 %v492_v0 }
  0x44   :  { %398 = vmatpush3.bf16.msra.mxu1 %v397_v47 }
  0x45   :  { %399 = vmatprep.subr.bf16.mxu1 %v492_v0 }
  0x46   :  { %377 = vmatpush3.bf16.msra.mxu0 %v376_v40 }
  0x48   :  { %401 = vmatpush3.bf16.msra.mxu1 %v400_v50 }
  0x49   :  { %317 = vmatmul.mubr.f32.vlgmr.msra.gmra.mrb[0].mxu0 %v38_v41 }
 0x11c   :  { %v142_v52 = vpop.f32.mrb[0].mxu0 }
 0x11d   :  { %v143_v53 = vadd.f32 %v249_v51, %v142_v52  ;;  %v318_v54 = vpop.f32.mrb[1].mxu0 }
 0x11f   :  { %410 = vtanh.f32 %v143_v53 }
 0x129   :  { %v411_v55 = vpop.eup %410 }
 0x12a   :  { %230 = vst [vmem:[#allocation7] sm:$0xff] %v411_v55  ;;  %352 = vmatmul.mubr.f32.vlgmr.msra.gmra.mrb[0].mxu1 %v411_v55 }
 0x1fd   :  { %v213_v58 = vpop.f32.mrb[0].mxu1 }
 0x1fe   :  { %231 = vst [vmem:[#allocation7 + $0x8] sm:$0xff] %v213_v58  ;;  %v353_v59 = vpop.f32.mrb[1].mxu1  ;;  %v220_v60 = vsel %vm219_vm1, %v213_v58, -1e+30 }
 0x1ff   :  { %221 = vmax.xlane.f32.xlu0 %v220_v60 }
 0x28c   :  { %v222_v61 = vpop.xlane.xlu0 %221 }
 0x28d   :  { %v223_v62 = vsub.f32 %v220_v60, %v222_v61 }
 0x28f   :  { %v224_v63 = vmul.f32 1.442695, %v223_v62 }
 0x291   :  { %412 = vpow2.f32 %v224_v63 }
 0x29b   :  { %v413_v0 = vpop.eup %412 }
 0x29c   :  { %226 = vadd.xlane.f32.xlu0 %v413_v0 }
 0x329   :  { %v227_v1 = vpop.xlane.xlu0 %226 }
 0x32a   :  { %414 = vrcp.f32 %v227_v1 }
 0x334   :  { %v415_v2 = vpop.eup %414 }
 0x335   :  { %v229_v3 = vmul.f32 %v415_v2, %v413_v0 }
 0x337   :  { %232 = vst [vmem:[#allocation7 + $0x10] sm:$0xff] %v229_v3 }
 0x338   :  { %471 = shalt.err (!%p468_p6)
}
 0x339   :  { %s472_s10 = scalar_lea.hbm %s572_s2, 384 }
 0x33a   :  { %p473_p7 = scmp.ne.s32.totalorder %s572_s2, %s472_s10  ;;  %p476_p8 = scmp.lt.u32.totalorder %s472_s10, %s572_s2 }
 0x33c   :  { %p478_p9 = pnand %p476_p8, %p473_p7 }
 0x33e   :  { %481 = shalt.err (!%p478_p9)
}
 0x33f   :  { %242 = dma.vmem_to_hbm [thread:$0]  %s240_s6, 384, %s572_s2, [#allocation4]  }
 0x340   :  { %486 = dma.done.wait [#allocation4], 384  }
 0x341   :  { %487 = vsyncadd [#allocation4], 4294966912 }
 0x342   :  { %246 = vsyncpa [#allocation3], 1 }
 0x343   :  { %247 = vsyncpa [#allocation6], 1 }
 0x344   :  { %248 = vsyncpa [#allocation4], 1 }

</bundles_post_ra>
